<compile_context>
chip_gen: v7x
topology: tpu7x:2x2x1
jax: 0.10.0
libtpu: 0.0.40
codegen_flags: <defaults>
</compile_context>

<pallas_src>
import functools

import jax
import jax.numpy as jnp
from jax.experimental import pallas as pl
from jax.experimental.pallas import tpu as pltpu

# Logical shapes (small, self-consistent demo sizes).
B = 8     # batch
D = 32    # ODE state dimension (logical)
H = 64    # hidden width of the dynamics MLP (logical)
S = 8     # number of time points (S-1 Euler steps)

# Lane-dense padded dims (vreg lane width = 128) and batch tile.
DP = 128
HP = 128
TB = 8    # batch rows per grid step (one (8,128) vreg of state)


def node_kernel(t_ref, x_ref, w1_ref, w2_ref, bias_ref, out_ref):
    """Euler-integrate the MLP dynamics over the time grid for one batch tile.

    t_ref   : SMEM (S,)         float32 time points (whole array, un-blocked)
    x_ref   : VMEM (TB, DP)     initial state tile (lane-padded with zeros)
    w1_ref  : VMEM (DP, HP)     first-layer weight (padded)
    w2_ref  : VMEM (HP, DP)     second-layer weight (padded)
    bias_ref: VMEM (8, 128)     row 0 = b1, row 1 = wt, row 2 = b2 (padded)
    out_ref : VMEM (S, TB, DP)  trajectory; out[0] == x
    """
    b1_row = bias_ref[0:1, :]   # (1, HP)
    wt_row = bias_ref[1:2, :]   # (1, HP)
    b2_row = bias_ref[2:3, :]   # (1, DP)

    # Precompute everything that is off the serial Euler dependency chain:
    # per-step first-layer bias rows (scalar FMA + sublane broadcast) and dt.
    bias1 = [jnp.broadcast_to(b1_row + t_ref[i] * wt_row, (TB, HP))
             for i in range(S - 1)]
    dt = [t_ref[i + 1] - t_ref[i] for i in range(S - 1)]
    b2_b = jnp.broadcast_to(b2_row, (TB, DP))

    h = x_ref[...]
    out_ref[0] = h

    # Static trip count of S-1 = 7 -> fully unrolled (single basic block) so
    # the LLO scheduler can overlap adjacent steps' MXU/EUP/VPU work.
    for i in range(S - 1):
        # Stream W1/W2 from VMEM straight into the MXU (no vreg hoist).
        pre = jnp.dot(h, w1_ref[...],
                      preferred_element_type=jnp.float32) + bias1[i]
        z = jnp.tanh(pre)                                    # EUP
        dh = jnp.dot(z, w2_ref[...],
                     preferred_element_type=jnp.float32) + b2_b
        h = h + dt[i] * dh
        out_ref[i + 1] = h


def prepare_params(params):
    """One-time parameter padding/packing (keep OUT of the per-call path)."""
    w1, b1, wt, w2, b2 = params
    w1p = jnp.zeros((DP, HP), jnp.float32).at[:D, :H].set(w1)
    w2p = jnp.zeros((HP, DP), jnp.float32).at[:H, :D].set(w2)
    bias = jnp.zeros((8, 128), jnp.float32)
    bias = bias.at[0, :H].set(b1[0])
    bias = bias.at[1, :H].set(wt[0])
    bias = bias.at[2, :D].set(b2[0])
    return w1p, w2p, bias


@jax.jit
def neural_ode_forecaster(x, t, padded_params):
    """Per-call path: pad x, run the kernel, slice the lane/batch padding off."""
    w1p, w2p, bias = padded_params
    b = x.shape[0]
    nb = -(-b // TB)          # ceil-div (static at trace time)
    bp = nb * TB

    # Single cheap pad per call (batch to TB multiple, lanes to 128).
    xp = jnp.zeros((bp, DP), jnp.float32).at[:b, :D].set(x)

    grid_spec = pltpu.PrefetchScalarGridSpec(
        num_scalar_prefetch=0,
        grid=(nb,),
        in_specs=[
            # t: whole array resident in SMEM (scalar reads in the kernel).
            pl.BlockSpec(memory_space=pltpu.MemorySpace.SMEM),
            # x: one batch tile per grid step.
            pl.BlockSpec((TB, DP), lambda i: (i, 0)),
            # Weights / bias pack: replicated across the batch grid axis
            # (same block index -> no re-DMA between consecutive steps).
            pl.BlockSpec((DP, HP), lambda i: (0, 0)),
            pl.BlockSpec((HP, DP), lambda i: (0, 0)),
            pl.BlockSpec((8, 128), lambda i: (0, 0)),
        ],
        out_specs=pl.BlockSpec((S, TB, DP), lambda i: (0, i, 0)),
    )

    out_p = pl.pallas_call(
        node_kernel,
        out_shape=jax.ShapeDtypeStruct((S, bp, DP), jnp.float32),
        grid_spec=grid_spec,
        compiler_params=pltpu.CompilerParams(
            # Batch tiles are independent -> shard across TCs on v7x.
            dimension_semantics=("parallel",)),
    )(t, xp, w1p, w2p, bias)

    # Slice the batch/lane padding back off (fused into the jitted call).
    return out_p[:, :b, :D]


def ref_forward(x, t, params):
    """Pure-JAX reference for correctness checking (unpadded)."""
    w1, b1, wt, w2, b2 = params
    h = x
    outs = [h]
    for i in range(S - 1):
        ti = t[i]
        dti = t[i + 1] - t[i]
        z = jnp.tanh(h @ w1 + b1 + ti * wt)
        h = h + dti * (z @ w2 + b2)
        outs.append(h)
    return jnp.stack(outs, axis=0)


def make_params(key):
    k1, k2, k3, k4, k5 = jax.random.split(key, 5)
    w1 = jax.random.normal(k1, (D, H), jnp.float32) * (1.0 / jnp.sqrt(D))
    b1 = jax.random.normal(k2, (1, H), jnp.float32) * 0.01
    wt = jax.random.normal(k3, (1, H), jnp.float32) * 0.01
    w2 = jax.random.normal(k4, (H, D), jnp.float32) * (1.0 / jnp.sqrt(H))
    b2 = jax.random.normal(k5, (1, D), jnp.float32) * 0.01
    return (w1, b1, wt, w2, b2)


if __name__ == "__main__":
    root = jax.random.PRNGKey(0)
    k_params, k_x = jax.random.split(root)

    params = make_params(k_params)
    padded_params = prepare_params(params)   # done once, off the call path

    x = jax.random.normal(k_x, (B, D), jnp.float32)
    t = jnp.linspace(0.0, 1.0, S, dtype=jnp.float32)

    out = neural_ode_forecaster(x, t, padded_params)
    out = jax.block_until_ready(out)

    ref = ref_forward(x, t, params)
    assert out.shape == (S, B, D)
    # Default (possibly multi-pass bf16) matmul precision in both kernel and
    # reference; 1e-4 tolerance is robust across TPU generations.
    assert jnp.allclose(out, ref, rtol=1e-4, atol=1e-4), \
        "mismatch vs pure-JAX reference"

    print("KERNEL_OK")
</pallas_src>

<mosaic_0001>
module attributes {stable_mosaic.version = 11 : i64} {
  func.func @node_kernel(%arg0: i32, %arg1: memref<8xf32, #tpu.memory_space<smem>>, %arg2: memref<8x128xf32, #tpu.memory_space<vmem>>, %arg3: memref<128x128xf32, #tpu.memory_space<vmem>>, %arg4: memref<128x128xf32, #tpu.memory_space<vmem>>, %arg5: memref<8x128xf32, #tpu.memory_space<vmem>>, %arg6: memref<8x8x128xf32, #tpu.memory_space<vmem>>) attributes {dimension_semantics = [#tpu.dimension_semantics<parallel>], iteration_bounds = array<i64: 1>, scalar_prefetch = 0 : i64, scratch_operands = 0 : i64, tpu.core_type = #tpu.core_type<tc>, window_params = [{transform_indices = @transform_0, window_bounds = array<i64: 8>}, {transform_indices = @transform_1, window_bounds = array<i64: 8, 128>}, {pipeline_mode = #tpu.pipeline_mode<synchronous>, transform_indices = @transform_2, window_bounds = array<i64: 128, 128>}, {pipeline_mode = #tpu.pipeline_mode<synchronous>, transform_indices = @transform_3, window_bounds = array<i64: 128, 128>}, {pipeline_mode = #tpu.pipeline_mode<synchronous>, transform_indices = @transform_4, window_bounds = array<i64: 8, 128>}, {transform_indices = @transform_5, window_bounds = array<i64: 8, 8, 128>}]} {
    %c0 = arith.constant 0 : index
    %c0_0 = arith.constant 0 : index
    %0 = vector.load %arg5[%c0, %c0_0] : memref<8x128xf32, #tpu.memory_space<vmem>>, vector<1x128xf32>
    %c1 = arith.constant 1 : index
    %c0_1 = arith.constant 0 : index
    %1 = vector.load %arg5[%c1, %c0_1] : memref<8x128xf32, #tpu.memory_space<vmem>>, vector<1x128xf32>
    %c2 = arith.constant 2 : index
    %c0_2 = arith.constant 0 : index
    %2 = vector.load %arg5[%c2, %c0_2] : memref<8x128xf32, #tpu.memory_space<vmem>>, vector<1x128xf32>
    %c0_3 = arith.constant 0 : index
    %3 = memref.load %arg1[%c0_3] : memref<8xf32, #tpu.memory_space<smem>>
    %4 = vector.broadcast %3 : f32 to vector<1x128xf32>
    %5 = arith.mulf %4, %1 : vector<1x128xf32>
    %6 = arith.addf %0, %5 : vector<1x128xf32>
    %7 = vector.shape_cast %6 : vector<1x128xf32> to vector<1x128xf32>
    %8 = vector.broadcast %7 : vector<1x128xf32> to vector<8x128xf32>
    %c1_4 = arith.constant 1 : index
    %9 = memref.load %arg1[%c1_4] : memref<8xf32, #tpu.memory_space<smem>>
    %10 = vector.broadcast %9 : f32 to vector<1x128xf32>
    %11 = arith.mulf %10, %1 : vector<1x128xf32>
    %12 = arith.addf %0, %11 : vector<1x128xf32>
    %13 = vector.shape_cast %12 : vector<1x128xf32> to vector<1x128xf32>
    %14 = vector.broadcast %13 : vector<1x128xf32> to vector<8x128xf32>
    %c2_5 = arith.constant 2 : index
    %15 = memref.load %arg1[%c2_5] : memref<8xf32, #tpu.memory_space<smem>>
    %16 = vector.broadcast %15 : f32 to vector<1x128xf32>
    %17 = arith.mulf %16, %1 : vector<1x128xf32>
    %18 = arith.addf %0, %17 : vector<1x128xf32>
    %19 = vector.shape_cast %18 : vector<1x128xf32> to vector<1x128xf32>
    %20 = vector.broadcast %19 : vector<1x128xf32> to vector<8x128xf32>
    %c3 = arith.constant 3 : index
    %21 = memref.load %arg1[%c3] : memref<8xf32, #tpu.memory_space<smem>>
    %22 = vector.broadcast %21 : f32 to vector<1x128xf32>
    %23 = arith.mulf %22, %1 : vector<1x128xf32>
    %24 = arith.addf %0, %23 : vector<1x128xf32>
    %25 = vector.shape_cast %24 : vector<1x128xf32> to vector<1x128xf32>
    %26 = vector.broadcast %25 : vector<1x128xf32> to vector<8x128xf32>
    %c4 = arith.constant 4 : index
    %27 = memref.load %arg1[%c4] : memref<8xf32, #tpu.memory_space<smem>>
    %28 = vector.broadcast %27 : f32 to vector<1x128xf32>
    %29 = arith.mulf %28, %1 : vector<1x128xf32>
    %30 = arith.addf %0, %29 : vector<1x128xf32>
    %31 = vector.shape_cast %30 : vector<1x128xf32> to vector<1x128xf32>
    %32 = vector.broadcast %31 : vector<1x128xf32> to vector<8x128xf32>
    %c5 = arith.constant 5 : index
    %33 = memref.load %arg1[%c5] : memref<8xf32, #tpu.memory_space<smem>>
    %34 = vector.broadcast %33 : f32 to vector<1x128xf32>
    %35 = arith.mulf %34, %1 : vector<1x128xf32>
    %36 = arith.addf %0, %35 : vector<1x128xf32>
    %37 = vector.shape_cast %36 : vector<1x128xf32> to vector<1x128xf32>
    %38 = vector.broadcast %37 : vector<1x128xf32> to vector<8x128xf32>
    %c6 = arith.constant 6 : index
    %39 = memref.load %arg1[%c6] : memref<8xf32, #tpu.memory_space<smem>>
    %40 = vector.broadcast %39 : f32 to vector<1x128xf32>
    %41 = arith.mulf %40, %1 : vector<1x128xf32>
    %42 = arith.addf %0, %41 : vector<1x128xf32>
    %43 = vector.shape_cast %42 : vector<1x128xf32> to vector<1x128xf32>
    %44 = vector.broadcast %43 : vector<1x128xf32> to vector<8x128xf32>
    %c1_6 = arith.constant 1 : index
    %45 = memref.load %arg1[%c1_6] : memref<8xf32, #tpu.memory_space<smem>>
    %c0_7 = arith.constant 0 : index
    %46 = memref.load %arg1[%c0_7] : memref<8xf32, #tpu.memory_space<smem>>
    %47 = arith.subf %45, %46 : f32
    %c2_8 = arith.constant 2 : index
    %48 = memref.load %arg1[%c2_8] : memref<8xf32, #tpu.memory_space<smem>>
    %c1_9 = arith.constant 1 : index
    %49 = memref.load %arg1[%c1_9] : memref<8xf32, #tpu.memory_space<smem>>
    %50 = arith.subf %48, %49 : f32
    %c3_10 = arith.constant 3 : index
    %51 = memref.load %arg1[%c3_10] : memref<8xf32, #tpu.memory_space<smem>>
    %c2_11 = arith.constant 2 : index
    %52 = memref.load %arg1[%c2_11] : memref<8xf32, #tpu.memory_space<smem>>
    %53 = arith.subf %51, %52 : f32
    %c4_12 = arith.constant 4 : index
    %54 = memref.load %arg1[%c4_12] : memref<8xf32, #tpu.memory_space<smem>>
    %c3_13 = arith.constant 3 : index
    %55 = memref.load %arg1[%c3_13] : memref<8xf32, #tpu.memory_space<smem>>
    %56 = arith.subf %54, %55 : f32
    %c5_14 = arith.constant 5 : index
    %57 = memref.load %arg1[%c5_14] : memref<8xf32, #tpu.memory_space<smem>>
    %c4_15 = arith.constant 4 : index
    %58 = memref.load %arg1[%c4_15] : memref<8xf32, #tpu.memory_space<smem>>
    %59 = arith.subf %57, %58 : f32
    %c6_16 = arith.constant 6 : index
    %60 = memref.load %arg1[%c6_16] : memref<8xf32, #tpu.memory_space<smem>>
    %c5_17 = arith.constant 5 : index
    %61 = memref.load %arg1[%c5_17] : memref<8xf32, #tpu.memory_space<smem>>
    %62 = arith.subf %60, %61 : f32
    %c7 = arith.constant 7 : index
    %63 = memref.load %arg1[%c7] : memref<8xf32, #tpu.memory_space<smem>>
    %c6_18 = arith.constant 6 : index
    %64 = memref.load %arg1[%c6_18] : memref<8xf32, #tpu.memory_space<smem>>
    %65 = arith.subf %63, %64 : f32
    %66 = vector.shape_cast %2 : vector<1x128xf32> to vector<1x128xf32>
    %67 = vector.broadcast %66 : vector<1x128xf32> to vector<8x128xf32>
    %c0_19 = arith.constant 0 : index
    %c0_20 = arith.constant 0 : index
    %68 = vector.load %arg2[%c0_19, %c0_20] : memref<8x128xf32, #tpu.memory_space<vmem>>, vector<8x128xf32>
    %c0_21 = arith.constant 0 : index
    %c0_22 = arith.constant 0 : index
    %c0_23 = arith.constant 0 : index
    %69 = vector.load %arg6[%c0_21, %c0_22, %c0_23] : memref<8x8x128xf32, #tpu.memory_space<vmem>>, vector<1x8x128xf32>
    %70 = vector.shape_cast %69 : vector<1x8x128xf32> to vector<8x128xf32>
    %71 = vector.shape_cast %68 : vector<8x128xf32> to vector<1x8x128xf32>
    tpu.vector_store %arg6[%c0_21, %c0_22, %c0_23], %71 {strides = array<i32>} : memref<8x8x128xf32, #tpu.memory_space<vmem>>, vector<1x8x128xf32>,
    %c0_24 = arith.constant 0 : index
    %c0_25 = arith.constant 0 : index
    %72 = vector.load %arg3[%c0_24, %c0_25] : memref<128x128xf32, #tpu.memory_space<vmem>>, vector<128x128xf32>
    %cst = arith.constant dense<0.000000e+00> : vector<8x128xf32>
    %73 = tpu.matmul %68, %72, %cst {dimension_numbers = #tpu.dot_dimension_numbers<[1], [0], [0], [1], [0, 0, 1, 1], [], []>} : vector<8x128xf32>, vector<128x128xf32>, vector<8x128xf32> -> vector<8x128xf32>
    %74 = arith.addf %73, %8 : vector<8x128xf32>
    %75 = math.tanh %74 : vector<8x128xf32>
    %c0_26 = arith.constant 0 : index
    %c0_27 = arith.constant 0 : index
    %76 = vector.load %arg4[%c0_26, %c0_27] : memref<128x128xf32, #tpu.memory_space<vmem>>, vector<128x128xf32>
    %cst_28 = arith.constant dense<0.000000e+00> : vector<8x128xf32>
    %77 = tpu.matmul %75, %76, %cst_28 {dimension_numbers = #tpu.dot_dimension_numbers<[1], [0], [0], [1], [0, 0, 1, 1], [], []>} : vector<8x128xf32>, vector<128x128xf32>, vector<8x128xf32> -> vector<8x128xf32>
    %78 = arith.addf %77, %67 : vector<8x128xf32>
    %79 = vector.broadcast %47 : f32 to vector<8x128xf32>
    %80 = arith.mulf %79, %78 : vector<8x128xf32>
    %81 = arith.addf %68, %80 : vector<8x128xf32>
    %c1_29 = arith.constant 1 : index
    %c0_30 = arith.constant 0 : index
    %c0_31 = arith.constant 0 : index
    %82 = vector.load %arg6[%c1_29, %c0_30, %c0_31] : memref<8x8x128xf32, #tpu.memory_space<vmem>>, vector<1x8x128xf32>
    %83 = vector.shape_cast %82 : vector<1x8x128xf32> to vector<8x128xf32>
    %84 = vector.shape_cast %81 : vector<8x128xf32> to vector<1x8x128xf32>
    tpu.vector_store %arg6[%c1_29, %c0_30, %c0_31], %84 {strides = array<i32>} : memref<8x8x128xf32, #tpu.memory_space<vmem>>, vector<1x8x128xf32>,
    %c0_32 = arith.constant 0 : index
    %c0_33 = arith.constant 0 : index
    %85 = vector.load %arg3[%c0_32, %c0_33] : memref<128x128xf32, #tpu.memory_space<vmem>>, vector<128x128xf32>
    %cst_34 = arith.constant dense<0.000000e+00> : vector<8x128xf32>
    %86 = tpu.matmul %81, %85, %cst_34 {dimension_numbers = #tpu.dot_dimension_numbers<[1], [0], [0], [1], [0, 0, 1, 1], [], []>} : vector<8x128xf32>, vector<128x128xf32>, vector<8x128xf32> -> vector<8x128xf32>
    %87 = arith.addf %86, %14 : vector<8x128xf32>
    %88 = math.tanh %87 : vector<8x128xf32>
    %c0_35 = arith.constant 0 : index
    %c0_36 = arith.constant 0 : index
    %89 = vector.load %arg4[%c0_35, %c0_36] : memref<128x128xf32, #tpu.memory_space<vmem>>, vector<128x128xf32>
    %cst_37 = arith.constant dense<0.000000e+00> : vector<8x128xf32>
    %90 = tpu.matmul %88, %89, %cst_37 {dimension_numbers = #tpu.dot_dimension_numbers<[1], [0], [0], [1], [0, 0, 1, 1], [], []>} : vector<8x128xf32>, vector<128x128xf32>, vector<8x128xf32> -> vector<8x128xf32>
    %91 = arith.addf %90, %67 : vector<8x128xf32>
    %92 = vector.broadcast %50 : f32 to vector<8x128xf32>
    %93 = arith.mulf %92, %91 : vector<8x128xf32>
    %94 = arith.addf %81, %93 : vector<8x128xf32>
    %c2_38 = arith.constant 2 : index
    %c0_39 = arith.constant 0 : index
    %c0_40 = arith.constant 0 : index
    %95 = vector.load %arg6[%c2_38, %c0_39, %c0_40] : memref<8x8x128xf32, #tpu.memory_space<vmem>>, vector<1x8x128xf32>
    %96 = vector.shape_cast %95 : vector<1x8x128xf32> to vector<8x128xf32>
    %97 = vector.shape_cast %94 : vector<8x128xf32> to vector<1x8x128xf32>
    tpu.vector_store %arg6[%c2_38, %c0_39, %c0_40], %97 {strides = array<i32>} : memref<8x8x128xf32, #tpu.memory_space<vmem>>, vector<1x8x128xf32>,
    %c0_41 = arith.constant 0 : index
    %c0_42 = arith.constant 0 : index
    %98 = vector.load %arg3[%c0_41, %c0_42] : memref<128x128xf32, #tpu.memory_space<vmem>>, vector<128x128xf32>
    %cst_43 = arith.constant dense<0.000000e+00> : vector<8x128xf32>
    %99 = tpu.matmul %94, %98, %cst_43 {dimension_numbers = #tpu.dot_dimension_numbers<[1], [0], [0], [1], [0, 0, 1, 1], [], []>} : vector<8x128xf32>, vector<128x128xf32>, vector<8x128xf32> -> vector<8x128xf32>
    %100 = arith.addf %99, %20 : vector<8x128xf32>
    %101 = math.tanh %100 : vector<8x128xf32>
    %c0_44 = arith.constant 0 : index
    %c0_45 = arith.constant 0 : index
    %102 = vector.load %arg4[%c0_44, %c0_45] : memref<128x128xf32, #tpu.memory_space<vmem>>, vector<128x128xf32>
    %cst_46 = arith.constant dense<0.000000e+00> : vector<8x128xf32>
    %103 = tpu.matmul %101, %102, %cst_46 {dimension_numbers = #tpu.dot_dimension_numbers<[1], [0], [0], [1], [0, 0, 1, 1], [], []>} : vector<8x128xf32>, vector<128x128xf32>, vector<8x128xf32> -> vector<8x128xf32>
    %104 = arith.addf %103, %67 : vector<8x128xf32>
    %105 = vector.broadcast %53 : f32 to vector<8x128xf32>
    %106 = arith.mulf %105, %104 : vector<8x128xf32>
    %107 = arith.addf %94, %106 : vector<8x128xf32>
    %c3_47 = arith.constant 3 : index
    %c0_48 = arith.constant 0 : index
    %c0_49 = arith.constant 0 : index
    %108 = vector.load %arg6[%c3_47, %c0_48, %c0_49] : memref<8x8x128xf32, #tpu.memory_space<vmem>>, vector<1x8x128xf32>
    %109 = vector.shape_cast %108 : vector<1x8x128xf32> to vector<8x128xf32>
    %110 = vector.shape_cast %107 : vector<8x128xf32> to vector<1x8x128xf32>
    tpu.vector_store %arg6[%c3_47, %c0_48, %c0_49], %110 {strides = array<i32>} : memref<8x8x128xf32, #tpu.memory_space<vmem>>, vector<1x8x128xf32>,
    %c0_50 = arith.constant 0 : index
    %c0_51 = arith.constant 0 : index
    %111 = vector.load %arg3[%c0_50, %c0_51] : memref<128x128xf32, #tpu.memory_space<vmem>>, vector<128x128xf32>
    %cst_52 = arith.constant dense<0.000000e+00> : vector<8x128xf32>
    %112 = tpu.matmul %107, %111, %cst_52 {dimension_numbers = #tpu.dot_dimension_numbers<[1], [0], [0], [1], [0, 0, 1, 1], [], []>} : vector<8x128xf32>, vector<128x128xf32>, vector<8x128xf32> -> vector<8x128xf32>
    %113 = arith.addf %112, %26 : vector<8x128xf32>
    %114 = math.tanh %113 : vector<8x128xf32>
    %c0_53 = arith.constant 0 : index
    %c0_54 = arith.constant 0 : index
    %115 = vector.load %arg4[%c0_53, %c0_54] : memref<128x128xf32, #tpu.memory_space<vmem>>, vector<128x128xf32>
    %cst_55 = arith.constant dense<0.000000e+00> : vector<8x128xf32>
    %116 = tpu.matmul %114, %115, %cst_55 {dimension_numbers = #tpu.dot_dimension_numbers<[1], [0], [0], [1], [0, 0, 1, 1], [], []>} : vector<8x128xf32>, vector<128x128xf32>, vector<8x128xf32> -> vector<8x128xf32>
    %117 = arith.addf %116, %67 : vector<8x128xf32>
    %118 = vector.broadcast %56 : f32 to vector<8x128xf32>
    %119 = arith.mulf %118, %117 : vector<8x128xf32>
    %120 = arith.addf %107, %119 : vector<8x128xf32>
    %c4_56 = arith.constant 4 : index
    %c0_57 = arith.constant 0 : index
    %c0_58 = arith.constant 0 : index
    %121 = vector.load %arg6[%c4_56, %c0_57, %c0_58] : memref<8x8x128xf32, #tpu.memory_space<vmem>>, vector<1x8x128xf32>
    %122 = vector.shape_cast %121 : vector<1x8x128xf32> to vector<8x128xf32>
    %123 = vector.shape_cast %120 : vector<8x128xf32> to vector<1x8x128xf32>
    tpu.vector_store %arg6[%c4_56, %c0_57, %c0_58], %123 {strides = array<i32>} : memref<8x8x128xf32, #tpu.memory_space<vmem>>, vector<1x8x128xf32>,
    %c0_59 = arith.constant 0 : index
    %c0_60 = arith.constant 0 : index
    %124 = vector.load %arg3[%c0_59, %c0_60] : memref<128x128xf32, #tpu.memory_space<vmem>>, vector<128x128xf32>
    %cst_61 = arith.constant dense<0.000000e+00> : vector<8x128xf32>
    %125 = tpu.matmul %120, %124, %cst_61 {dimension_numbers = #tpu.dot_dimension_numbers<[1], [0], [0], [1], [0, 0, 1, 1], [], []>} : vector<8x128xf32>, vector<128x128xf32>, vector<8x128xf32> -> vector<8x128xf32>
    %126 = arith.addf %125, %32 : vector<8x128xf32>
    %127 = math.tanh %126 : vector<8x128xf32>
    %c0_62 = arith.constant 0 : index
    %c0_63 = arith.constant 0 : index
    %128 = vector.load %arg4[%c0_62, %c0_63] : memref<128x128xf32, #tpu.memory_space<vmem>>, vector<128x128xf32>
    %cst_64 = arith.constant dense<0.000000e+00> : vector<8x128xf32>
    %129 = tpu.matmul %127, %128, %cst_64 {dimension_numbers = #tpu.dot_dimension_numbers<[1], [0], [0], [1], [0, 0, 1, 1], [], []>} : vector<8x128xf32>, vector<128x128xf32>, vector<8x128xf32> -> vector<8x128xf32>
    %130 = arith.addf %129, %67 : vector<8x128xf32>
    %131 = vector.broadcast %59 : f32 to vector<8x128xf32>
    %132 = arith.mulf %131, %130 : vector<8x128xf32>
    %133 = arith.addf %120, %132 : vector<8x128xf32>
    %c5_65 = arith.constant 5 : index
    %c0_66 = arith.constant 0 : index
    %c0_67 = arith.constant 0 : index
    %134 = vector.load %arg6[%c5_65, %c0_66, %c0_67] : memref<8x8x128xf32, #tpu.memory_space<vmem>>, vector<1x8x128xf32>
    %135 = vector.shape_cast %134 : vector<1x8x128xf32> to vector<8x128xf32>
    %136 = vector.shape_cast %133 : vector<8x128xf32> to vector<1x8x128xf32>
    tpu.vector_store %arg6[%c5_65, %c0_66, %c0_67], %136 {strides = array<i32>} : memref<8x8x128xf32, #tpu.memory_space<vmem>>, vector<1x8x128xf32>,
    %c0_68 = arith.constant 0 : index
    %c0_69 = arith.constant 0 : index
    %137 = vector.load %arg3[%c0_68, %c0_69] : memref<128x128xf32, #tpu.memory_space<vmem>>, vector<128x128xf32>
    %cst_70 = arith.constant dense<0.000000e+00> : vector<8x128xf32>
    %138 = tpu.matmul %133, %137, %cst_70 {dimension_numbers = #tpu.dot_dimension_numbers<[1], [0], [0], [1], [0, 0, 1, 1], [], []>} : vector<8x128xf32>, vector<128x128xf32>, vector<8x128xf32> -> vector<8x128xf32>
    %139 = arith.addf %138, %38 : vector<8x128xf32>
    %140 = math.tanh %139 : vector<8x128xf32>
    %c0_71 = arith.constant 0 : index
    %c0_72 = arith.constant 0 : index
    %141 = vector.load %arg4[%c0_71, %c0_72] : memref<128x128xf32, #tpu.memory_space<vmem>>, vector<128x128xf32>
    %cst_73 = arith.constant dense<0.000000e+00> : vector<8x128xf32>
    %142 = tpu.matmul %140, %141, %cst_73 {dimension_numbers = #tpu.dot_dimension_numbers<[1], [0], [0], [1], [0, 0, 1, 1], [], []>} : vector<8x128xf32>, vector<128x128xf32>, vector<8x128xf32> -> vector<8x128xf32>
    %143 = arith.addf %142, %67 : vector<8x128xf32>
    %144 = vector.broadcast %62 : f32 to vector<8x128xf32>
    %145 = arith.mulf %144, %143 : vector<8x128xf32>
    %146 = arith.addf %133, %145 : vector<8x128xf32>
    %c6_74 = arith.constant 6 : index
    %c0_75 = arith.constant 0 : index
    %c0_76 = arith.constant 0 : index
    %147 = vector.load %arg6[%c6_74, %c0_75, %c0_76] : memref<8x8x128xf32, #tpu.memory_space<vmem>>, vector<1x8x128xf32>
    %148 = vector.shape_cast %147 : vector<1x8x128xf32> to vector<8x128xf32>
    %149 = vector.shape_cast %146 : vector<8x128xf32> to vector<1x8x128xf32>
    tpu.vector_store %arg6[%c6_74, %c0_75, %c0_76], %149 {strides = array<i32>} : memref<8x8x128xf32, #tpu.memory_space<vmem>>, vector<1x8x128xf32>,
    %c0_77 = arith.constant 0 : index
    %c0_78 = arith.constant 0 : index
    %150 = vector.load %arg3[%c0_77, %c0_78] : memref<128x128xf32, #tpu.memory_space<vmem>>, vector<128x128xf32>
    %cst_79 = arith.constant dense<0.000000e+00> : vector<8x128xf32>
    %151 = tpu.matmul %146, %150, %cst_79 {dimension_numbers = #tpu.dot_dimension_numbers<[1], [0], [0], [1], [0, 0, 1, 1], [], []>} : vector<8x128xf32>, vector<128x128xf32>, vector<8x128xf32> -> vector<8x128xf32>
    %152 = arith.addf %151, %44 : vector<8x128xf32>
    %153 = math.tanh %152 : vector<8x128xf32>
    %c0_80 = arith.constant 0 : index
    %c0_81 = arith.constant 0 : index
    %154 = vector.load %arg4[%c0_80, %c0_81] : memref<128x128xf32, #tpu.memory_space<vmem>>, vector<128x128xf32>
    %cst_82 = arith.constant dense<0.000000e+00> : vector<8x128xf32>
    %155 = tpu.matmul %153, %154, %cst_82 {dimension_numbers = #tpu.dot_dimension_numbers<[1], [0], [0], [1], [0, 0, 1, 1], [], []>} : vector<8x128xf32>, vector<128x128xf32>, vector<8x128xf32> -> vector<8x128xf32>
    %156 = arith.addf %155, %67 : vector<8x128xf32>
    %157 = vector.broadcast %65 : f32 to vector<8x128xf32>
    %158 = arith.mulf %157, %156 : vector<8x128xf32>
    %159 = arith.addf %146, %158 : vector<8x128xf32>
    %c7_83 = arith.constant 7 : index
    %c0_84 = arith.constant 0 : index
    %c0_85 = arith.constant 0 : index
    %160 = vector.load %arg6[%c7_83, %c0_84, %c0_85] : memref<8x8x128xf32, #tpu.memory_space<vmem>>, vector<1x8x128xf32>
    %161 = vector.shape_cast %160 : vector<1x8x128xf32> to vector<8x128xf32>
    %162 = vector.shape_cast %159 : vector<8x128xf32> to vector<1x8x128xf32>
    tpu.vector_store %arg6[%c7_83, %c0_84, %c0_85], %162 {strides = array<i32>} : memref<8x8x128xf32, #tpu.memory_space<vmem>>, vector<1x8x128xf32>,
    return
  }
  func.func @transform_0(%arg0: i32) -> i32 {
    %c0_i32 = arith.constant 0 : i32
    %c0_i32_0 = arith.constant 0 : i32
    return %c0_i32 : i32
  }
  func.func @transform_1(%arg0: i32) -> (i32, i32) {
    %c0_i32 = arith.constant 0 : i32
    %c0_i32_0 = arith.constant 0 : i32
    return %arg0, %c0_i32 : i32, i32
  }
  func.func @transform_2(%arg0: i32) -> (i32, i32) {
    %c0_i32 = arith.constant 0 : i32
    %c0_i32_0 = arith.constant 0 : i32
    %c0_i32_1 = arith.constant 0 : i32
    return %c0_i32, %c0_i32_0 : i32, i32
  }
  func.func @transform_3(%arg0: i32) -> (i32, i32) {
    %c0_i32 = arith.constant 0 : i32
    %c0_i32_0 = arith.constant 0 : i32
    %c0_i32_1 = arith.constant 0 : i32
    return %c0_i32, %c0_i32_0 : i32, i32
  }
  func.func @transform_4(%arg0: i32) -> (i32, i32) {
    %c0_i32 = arith.constant 0 : i32
    %c0_i32_0 = arith.constant 0 : i32
    %c0_i32_1 = arith.constant 0 : i32
    return %c0_i32, %c0_i32_0 : i32, i32
  }
  func.func @transform_5(%arg0: i32) -> (i32, i32, i32) {
    %c0_i32 = arith.constant 0 : i32
    %c0_i32_0 = arith.constant 0 : i32
    %c0_i32_1 = arith.constant 0 : i32
    return %c0_i32, %arg0, %c0_i32_0 : i32, i32, i32
  }
}

</mosaic_0001>

<bundles_post_ra>
// kernel: neural_ode_forecaster.1
= control target key start
LH: loop header
LB: loop body
LE: loop exit
PB: predicated region body
PF: predicated region fallthrough
CT: control target
= control target key end

     0   :  { %10 = vsyncpa [#allocation5], 0  ;;  %s3026_s0 = inlined_call_operand.vmem [shape: f32[8], index: 0, kind: input, shape index: {}]   ;;  %s3027_s1 = inlined_call_operand.vmem [shape: f32[8,128], index: 1, kind: input, shape index: {}]   ;;  %s3028_s2 = inlined_call_operand.hbm [shape: f32[128,128], index: 2, kind: input, shape index: {}]   ;;  %s3029_s3 = inlined_call_operand.hbm [shape: f32[128,128], index: 3, kind: input, shape index: {}]   ;;  %s3030_s4 = inlined_call_operand.vmem [shape: f32[8,128], index: 4, kind: input, shape index: {}]   ;;  %s3031_s5 = inlined_call_operand.hbm [shape: f32[8,8,128], index: 5, kind: output, shape index: {}]  }
   0x1   :  { %11 = vsyncpa [#allocation3], 0 }
   0x2   :  { %12 = vsyncpa [#allocation8], 0 }
   0x3   :  { %13 = vsyncpa [#allocation4], 0  ;;  %s20_s20 = sshll.u32 %s3026_s0, 4  ;;  %s21_s20 = int_to_ptr.vmem [resolvable:$true] %s20_s20 }
   0x4   :  { %s2495_s21 = scalar_lea.vmem %s21_s20, 16  ;;  %p2500_p1 = scmp.lt.s32.totalorder %s21_s20, %s21_s20 }
   0x5   :  { %p2496_p0 = scmp.ne.s32.totalorder %s21_s20, %s2495_s21  ;;  %p2501_p2 = scmp.lt.s32.totalorder %s2495_s21, %s2495_s21 }
   0x7   :  { %p2502_p3 = por %p2501_p2, %p2500_p1 }
   0x9   :  { %p2503_p4 = pnand %p2502_p3, %p2496_p0 }
   0xb   :  { %2506 = shalt.err (!%p2503_p4)
}
   0xc   :  { %s2581_s22 = smov [#allocation2]   ;;  %s2582_s23 = smov [#allocation6]  }
   0xd   :  { %23 = dma.vmem_to_smem %s21_s20, 16, %s2581_s22, [#allocation5]  }
   0xe   :  { %s31_s24 = sshll.u32 %s2582_s23, 4  ;;  %s2507_s27 = scalar_lea.hbm %s3028_s2, 2048  ;;  %s32_s24 = int_to_ptr.vmem [resolvable:$true] %s31_s24 }
   0xf   :  { %p2508_p5 = scmp.ne.s32.totalorder %s3028_s2, %s2507_s27  ;;  %p2511_p6 = scmp.lt.u32.totalorder %s2507_s27, %s3028_s2 }
  0x11   :  { %p2513_p7 = pnand %p2511_p6, %p2508_p5 }
  0x13   :  { %2516 = shalt.err (!%p2513_p7)
}
  0x14   :  { %s2517_s6 = scalar_lea.vmem %s32_s24, 2048  ;;  %p2522_p9 = scmp.lt.s32.totalorder %s32_s24, %s32_s24 }
  0x15   :  { %p2518_p8 = scmp.ne.s32.totalorder %s32_s24, %s2517_s6  ;;  %p2523_p10 = scmp.lt.s32.totalorder %s2517_s6, %s2517_s6 }
  0x17   :  { %p2524_p11 = por %p2523_p10, %p2522_p9 }
  0x19   :  { %p2525_p12 = pnand %p2524_p11, %p2518_p8 }
  0x1b   :  { %2528 = shalt.err (!%p2525_p12)
}
  0x1c   :  { %s2583_s7 = smov 128   ;;  %s2584_s8 = smov 8  }
  0x1d   :  { %37 = dma.hbm_to_vmem [thread:$0]  %s3028_s2, 2048, %s32_s24, [#allocation3], %s2583_s7, %s2583_s7, %s2584_s8  }
  0x1e   :  { %s2585_s11 = smov [#allocation7]   ;;  %s2529_s15 = scalar_lea.hbm %s3029_s3, 2048 }
  0x1f   :  { %s43_s12 = sshll.u32 %s2585_s11, 4  ;;  %p2530_p13 = scmp.ne.s32.totalorder %s3029_s3, %s2529_s15  ;;  %s44_s12 = int_to_ptr.vmem [resolvable:$true] %s43_s12 }
  0x20   :  { %p2533_p0 = scmp.lt.u32.totalorder %s2529_s15, %s3029_s3 }
  0x22   :  { %p2535_p1 = pnand %p2533_p0, %p2530_p13 }
  0x24   :  { %2538 = shalt.err (!%p2535_p1)
}
  0x25   :  { %s2539_s20 = scalar_lea.vmem %s44_s12, 2048  ;;  %p2544_p3 = scmp.lt.s32.totalorder %s44_s12, %s44_s12 }
  0x26   :  { %p2540_p2 = scmp.ne.s32.totalorder %s44_s12, %s2539_s20  ;;  %p2545_p4 = scmp.lt.s32.totalorder %s2539_s20, %s2539_s20 }
  0x28   :  { %p2546_p5 = por %p2545_p4, %p2544_p3 }
  0x2a   :  { %p2547_p6 = pnand %p2546_p5, %p2540_p2 }
  0x2c   :  { %2550 = shalt.err (!%p2547_p6)
}
  0x2d   :  { %49 = dma.hbm_to_vmem [thread:$0]  %s3029_s3, 2048, %s44_s12, [#allocation8], %s2583_s7, %s2583_s7, %s2584_s8  }
  0x2e   :  { %2573 = dma.done.wait [#allocation5], 16  }
  0x2f   :  { %2574 = vsyncadd [#allocation5], 4294967280 }
  0x30   :  { %2575 = dma.done.wait [#allocation3], 2048  }
  0x31   :  { %2576 = vsyncadd [#allocation3], 4294965248 }
  0x32   :  { %2577 = dma.done.wait [#allocation8], 2048  }
  0x33   :  { %2578 = vsyncadd [#allocation8], 4294965248 }
  0x34   :  { %61 = sfence }
  0x35   :  { %v135_v0 = vld [vmem:[#allocation6] sm:$0xff]  ;;  %v136_v1 = vld [vmem:[#allocation6 + $0x8] sm:$0xff]  ;;  %v137_v2 = vld [vmem:[#allocation6 + $0x10] sm:$0xff]  ;;  %v2586_v3 = vmov 0.0|0.0   ;;  %vm2587_vm0 = vmmov 0   ;;  %v2588_v6 = vmov 0.0   ;;  %v69_v51 = vlaneseq }
  0x36   :  { %2136 = vmatprep.subr.bf16.mxu0 %v2586_v3  ;;  %v2654_v4 = vpack.c.bf16 %v136_v1, %v135_v0  ;;  %v138_v5 = vld [vmem:[#allocation6 + $0x18] sm:$0xff]  ;;  %1678 = vmatprep.mubr.msk.f32.mxu0 %vm2587_vm0, %v2588_v6  ;;  %v139_v8 = vld [vmem:[#allocation6 + $0x20] sm:$0xff]  ;;  %v140_v9 = vld [vmem:[#allocation6 + $0x28] sm:$0xff]  ;;  %s2784_s27 = sld [smem:[#allocation2 + $0x1]]  ;;  %s2880_s6 = sld [smem:[#allocation2 + $0x3]] }
  0x37   :  { %2160 = vmatprep.subr.bf16.mxu1 %v2586_v3  ;;  %1713 = vmatprep.mubr.msk.f32.mxu1 %vm2587_vm0, %v2588_v6  ;;  %v2662_v7 = vpack.c.bf16 %v138_v5, %v137_v2  ;;  %v2668_v10 = vld [vmem:[%s3027_s1] sm:$0xff]  ;;  %v223_v12 = vld [vmem:[#allocation7 + $0x8] sm:$0xff]  ;;  %v224_v13 = vld [vmem:[#allocation7 + $0x10] sm:$0xff]  ;;  %v2672_v15 = vpack.c.bf16 %v140_v9, %v139_v8  ;;  %s2748_s1 = sld [smem:[#allocation2]]  ;;  %v70_v55 = vshrl.u32 %v69_v51, 7  ;;  %s2925_s10 = sld [smem:[#allocation2 + $0x4]] }
  0x38   :  { %2138 = vmatpush3.bf16.msra.mxu0 %v2654_v4  ;;  %v222_v11 = vld [vmem:[#allocation7] sm:$0xff]  ;;  %134 = vst [vmem:[#allocation9] sm:$0xff] %v2668_v10  ;;  %v225_v14 = vld [vmem:[#allocation7 + $0x18] sm:$0xff]  ;;  %v141_v17 = vld [vmem:[#allocation6 + $0x30] sm:$0xff]  ;;  %s2968_s12 = sld [smem:[#allocation2 + $0x5]]  ;;  %s2997_s14 = sld [smem:[#allocation2 + $0x6]] }
  0x39   :  { %2139 = vmatprep.subr.bf16.mxu0 %v2586_v3  ;;  %v2674_v16 = vpack.c.bf16 %v223_v12, %v222_v11  ;;  %v142_v18 = vld [vmem:[#allocation6 + $0x38] sm:$0xff]  ;;  %v2678_v19 = vpack.c.bf16 %v225_v14, %v224_v13  ;;  %v226_v20 = vld [vmem:[#allocation7 + $0x20] sm:$0xff]  ;;  %v227_v21 = vld [vmem:[#allocation7 + $0x28] sm:$0xff]  ;;  %v2763_v58 = vsub.s32 0, %v70_v55  ;;  %s1406_s16 = sld [smem:[#allocation2 + $0x7]]  ;;  %s2589_s18 = smov [#allocation9]  }
  0x3a   :  { %v2682_v22 = vpack.c.bf16 %v142_v18, %v141_v17  ;;  %v143_v23 = vld [vmem:[#allocation6 + $0x40] sm:$0xff]  ;;  %v144_v24 = vld [vmem:[#allocation6 + $0x48] sm:$0xff]  ;;  %v2686_v25 = vpack.c.bf16 %v227_v21, %v226_v20  ;;  %v228_v26 = vld [vmem:[#allocation7 + $0x30] sm:$0xff]  ;;  %s1386_s19 = sshll.u32 %s2589_s18, 4  ;;  %s1387_s19 = int_to_ptr.vmem [resolvable:$true] %s1386_s19 }
  0x3b   :  { %2162 = vmatpush3.bf16.msra.mxu1 %v2674_v16  ;;  %v229_v27 = vld [vmem:[#allocation7 + $0x38] sm:$0xff]  ;;  %v2690_v28 = vpack.c.bf16 %v144_v24, %v143_v23  ;;  %v145_v29 = vld [vmem:[#allocation6 + $0x50] sm:$0xff]  ;;  %v230_v32 = vld [vmem:[#allocation7 + $0x40] sm:$0xff]  ;;  %s2551_s20 = scalar_lea.vmem %s1387_s19, 1024  ;;  %p2556_p8 = scmp.lt.s32.totalorder %s1387_s19, %s1387_s19 }
  0x3c   :  { %2141 = vmatpush3.bf16.msra.mxu0 %v2662_v7  ;;  %2163 = vmatprep.subr.bf16.mxu1 %v2586_v3  ;;  %v146_v30 = vld [vmem:[#allocation6 + $0x58] sm:$0xff]  ;;  %v2694_v31 = vpack.c.bf16 %v229_v27, %v228_v26  ;;  %v231_v33 = vld [vmem:[#allocation7 + $0x48] sm:$0xff]  ;;  %v147_v35 = vld [vmem:[#allocation6 + $0x60] sm:$0xff]  ;;  %p2552_p7 = scmp.ne.s32.totalorder %s1387_s19, %s2551_s20  ;;  %p2557_p9 = scmp.lt.s32.totalorder %s2551_s20, %s2551_s20 }
  0x3d   :  { %2142 = vmatprep.subr.bf16.mxu0 %v2586_v3  ;;  %v2698_v34 = vpack.c.bf16 %v146_v30, %v145_v29  ;;  %v148_v36 = vld [vmem:[#allocation6 + $0x68] sm:$0xff]  ;;  %v2702_v37 = vpack.c.bf16 %v231_v33, %v230_v32  ;;  %v149_v39 = vld [vmem:[#allocation6 + $0x70] sm:$0xff]  ;;  %v150_v40 = vld [vmem:[#allocation6 + $0x78] sm:$0xff]  ;;  %v66_v53 = vstv %s2748_s1  ;;  %s121_s28 = ssub.f32 %s2784_s27, %s2748_s1 }
  0x3e   :  { %v2706_v38 = vpack.c.bf16 %v148_v36, %v147_v35  ;;  %v2712_v41 = vpack.c.bf16 %v150_v40, %v149_v39  ;;  %v232_v42 = vld [vmem:[#allocation7 + $0x50] sm:$0xff]  ;;  %v233_v43 = vld [vmem:[#allocation7 + $0x58] sm:$0xff]  ;;  %v234_v45 = vld [vmem:[#allocation7 + $0x60] sm:$0xff]  ;;  %s124_s11 = ssub.f32 %s2925_s10, %s2880_s6  ;;  %p2558_p10 = por %p2557_p9, %p2556_p8 }
  0x3f   :  { %2165 = vmatpush3.bf16.msra.mxu1 %v2678_v19  ;;  %v2736_v44 = vpack.c.bf16 %v233_v43, %v232_v42  ;;  %v235_v46 = vld [vmem:[#allocation7 + $0x68] sm:$0xff]  ;;  %v236_v48 = vld [vmem:[#allocation7 + $0x70] sm:$0xff]  ;;  %v237_v49 = vld [vmem:[#allocation7 + $0x78] sm:$0xff]  ;;  %v308_v2 = vstv %s121_s28  ;;  %s125_s13 = ssub.f32 %s2968_s12, %s2925_s10 }
  0x40   :  { %2144 = vmatpush3.bf16.msra.mxu0 %v2672_v15  ;;  %2166 = vmatprep.subr.bf16.mxu1 %v2586_v3  ;;  %v2740_v47 = vpack.c.bf16 %v235_v46, %v234_v45  ;;  %v2743_v50 = vpack.c.bf16 %v237_v49, %v236_v48  ;;  %v2753_v52 = vld [vmem:[%s3030_s4 + $0x1] sm:$0x1]  ;;  %v2760_v56 = vld [vmem:[%s3030_s4] sm:$0x1]  ;;  %v2791_v0 = vld [vmem:[%s3030_s4 + $0x2] ss:$0 sm:$0xff]  ;;  %s126_s15 = ssub.f32 %s2997_s14, %s2968_s12  ;;  %p2559_p11 = pnand %p2558_p10, %p2552_p7 }
  0x41   :  { %2145 = vmatprep.subr.bf16.mxu0 %v2586_v3  ;;  %v67_v54 = vmul.f32 %v66_v53, %v2753_v52  ;;  %s2835_s4 = sld [smem:[#allocation2 + $0x2]]  ;;  %s128_s17 = ssub.f32 %s1406_s16, %s2997_s14 }
  0x43   :  { %2168 = vmatpush3.bf16.msra.mxu1 %v2686_v25  ;;  %v68_v57 = vadd.f32 %v67_v54, %v2760_v56  ;;  %v90_v54 = vstv %s2880_s6 }
  0x44   :  { %2147 = vmatpush3.bf16.msra.mxu0 %v2682_v22  ;;  %2169 = vmatprep.subr.bf16.mxu1 %v2586_v3  ;;  %v91_v55 = vmul.f32 %v90_v54, %v2753_v52 }
  0x45   :  { %2148 = vmatprep.subr.bf16.mxu0 %v2586_v3  ;;  %v72_v59 = vrot.slane %v68_v57, %v2763_v58 }
  0x46   :  { %v92_v57 = vadd.f32 %v91_v55, %v2760_v56 }
  0x47   :  { %2171 = vmatpush3.bf16.msra.mxu1 %v2694_v31  ;;  %s122_s30 = ssub.f32 %s2835_s4, %s2784_s27  ;;  %v82_v32 = vstv %s2835_s4 }
  0x48   :  { %2150 = vmatpush3.bf16.msra.mxu0 %v2690_v28  ;;  %2172 = vmatprep.subr.bf16.mxu1 %v2586_v3  ;;  %v83_v33 = vmul.f32 %v82_v32, %v2753_v52  ;;  %s123_s9 = ssub.f32 %s2880_s6, %s2835_s4  ;;  %v1210_v32 = vld [vmem:[#allocation6 + $0x38] sm:$0xff] }
  0x49   :  { %2151 = vmatprep.subr.bf16.mxu0 %v2586_v3  ;;  %v486_v24 = vstv %s122_s30 }
  0x4a   :  { %v84_v35 = vadd.f32 %v83_v33, %v2760_v56  ;;  %v664_v46 = vstv %s123_s9 }
  0x4b   :  { %2174 = vmatpush3.bf16.msra.mxu1 %v2702_v37 }
  0x4c   :  { %2153 = vmatpush3.bf16.msra.mxu0 %v2698_v34  ;;  %2175 = vmatprep.subr.bf16.mxu1 %v2586_v3  ;;  %v88_v36 = vrot.slane %v84_v35, %v2763_v58  ;;  %v1211_v35 = vld [vmem:[#allocation6 + $0x40] sm:$0xff] }
  0x4d   :  { %2154 = vmatprep.subr.bf16.mxu0 %v2586_v3 }
  0x4f   :  { %2177 = vmatpush3.bf16.msra.mxu1 %v2736_v44 }
  0x50   :  { %2156 = vmatpush3.bf16.msra.mxu0 %v2706_v38  ;;  %2178 = vmatprep.subr.bf16.mxu1 %v2586_v3 }
  0x51   :  { %2157 = vmatprep.subr.bf16.mxu0 %v2586_v3 }
  0x53   :  { %2180 = vmatpush3.bf16.msra.mxu1 %v2740_v47 }
  0x54   :  { %2159 = vmatpush3.bf16.msra.mxu0 %v2712_v41  ;;  %2181 = vmatprep.subr.bf16.mxu1 %v2586_v3 }
  0x55   :  { %2184 = vmatprep.subr.bf16.mxu0 %v2586_v3 }
  0x57   :  { %1679 = vmatmul.mubr.f32.vlgmr.msra.gmra.mrb[0].mxu0 %v2668_v10  ;;  %2183 = vmatpush3.bf16.msra.mxu1 %v2743_v50 }
  0x58   :  { %2186 = vmatpush3.bf16.msra.mxu0 %v2654_v4  ;;  %1748 = vmatprep.mubr.msk.f32.mxu0 %vm2587_vm0, %v2588_v6 }
  0x59   :  { %2187 = vmatprep.subr.bf16.mxu0 %v2586_v3  ;;  %2208 = vmatprep.subr.bf16.mxu1 %v2586_v3 }
  0x5c   :  { %2189 = vmatpush3.bf16.msra.mxu0 %v2662_v7 }
  0x5d   :  { %2190 = vmatprep.subr.bf16.mxu0 %v2586_v3 }
  0x60   :  { %2192 = vmatpush3.bf16.msra.mxu0 %v2672_v15 }
  0x61   :  { %2193 = vmatprep.subr.bf16.mxu0 %v2586_v3 }
  0x64   :  { %2195 = vmatpush3.bf16.msra.mxu0 %v2682_v22 }
  0x65   :  { %2196 = vmatprep.subr.bf16.mxu0 %v2586_v3 }
  0x68   :  { %2198 = vmatpush3.bf16.msra.mxu0 %v2690_v28 }
  0x69   :  { %2199 = vmatprep.subr.bf16.mxu0 %v2586_v3 }
  0x6c   :  { %2201 = vmatpush3.bf16.msra.mxu0 %v2698_v34 }
  0x6d   :  { %2202 = vmatprep.subr.bf16.mxu0 %v2586_v3 }
  0x70   :  { %2204 = vmatpush3.bf16.msra.mxu0 %v2706_v38 }
  0x71   :  { %2205 = vmatprep.subr.bf16.mxu0 %v2586_v3 }
  0x74   :  { %2207 = vmatpush3.bf16.msra.mxu0 %v2712_v41 }
  0x75   :  { %2232 = vmatprep.subr.bf16.mxu0 %v2586_v3 }
 0x12a   :  { %v217_v60 = vpop.f32.mrb[0].mxu0 }
 0x12b   :  { %v218_v61 = vadd.f32 %v217_v60, %v72_v59  ;;  %v1680_v62 = vpop.f32.mrb[1].mxu0  ;;  %v96_v59 = vrot.slane %v92_v57, %v2763_v58  ;;  %v1290_v57 = vld [vmem:[#allocation7] sm:$0xff] }
 0x12d   :  { %2481 = vtanh.f32 %v218_v61 }
 0x137   :  { %v2482_v63 = vpop.eup %2481 }
 0x138   :  { %1714 = vmatmul.mubr.f32.vlgmr.msra.gmra.mrb[0].mxu1 %v2482_v63 }
 0x139   :  { %2210 = vmatpush3.bf16.msra.mxu1 %v2674_v16  ;;  %1783 = vmatprep.mubr.msk.f32.mxu1 %vm2587_vm0, %v2588_v6 }
 0x13a   :  { %2211 = vmatprep.subr.bf16.mxu1 %v2586_v3 }
 0x13d   :  { %2213 = vmatpush3.bf16.msra.mxu1 %v2678_v19 }
 0x13e   :  { %2214 = vmatprep.subr.bf16.mxu1 %v2586_v3 }
 0x141   :  { %2216 = vmatpush3.bf16.msra.mxu1 %v2686_v25 }
 0x142   :  { %2217 = vmatprep.subr.bf16.mxu1 %v2586_v3 }
 0x145   :  { %2219 = vmatpush3.bf16.msra.mxu1 %v2694_v31 }
 0x146   :  { %2220 = vmatprep.subr.bf16.mxu1 %v2586_v3 }
 0x149   :  { %2222 = vmatpush3.bf16.msra.mxu1 %v2702_v37 }
 0x14a   :  { %2223 = vmatprep.subr.bf16.mxu1 %v2586_v3 }
 0x14d   :  { %2225 = vmatpush3.bf16.msra.mxu1 %v2736_v44 }
 0x14e   :  { %2226 = vmatprep.subr.bf16.mxu1 %v2586_v3 }
 0x151   :  { %2228 = vmatpush3.bf16.msra.mxu1 %v2740_v47 }
 0x152   :  { %2229 = vmatprep.subr.bf16.mxu1 %v2586_v3 }
 0x155   :  { %2231 = vmatpush3.bf16.msra.mxu1 %v2743_v50 }
 0x156   :  { %2256 = vmatprep.subr.bf16.mxu1 %v2586_v3 }
 0x20b   :  { %v304_v1 = vpop.f32.mrb[0].mxu1 }
 0x20c   :  { %v305_v5 = vadd.f32 %v2791_v0, %v304_v1  ;;  %v1715_v8 = vpop.f32.mrb[1].mxu1 }
 0x20e   :  { %v309_v9 = vmul.f32 %v308_v2, %v305_v5 }
 0x210   :  { %v310_v11 = vadd.f32 %v309_v9, %v2668_v10  ;;  %v74_v10 = vstv %s2784_s27 }
 0x211   :  { %v75_v12 = vmul.f32 %v74_v10, %v2753_v52 }
 0x212   :  { %312 = vst [vmem:[#allocation9 + $0x8] sm:$0xff] %v310_v11  ;;  %1749 = vmatmul.mubr.f32.vlgmr.msra.gmra.mrb[2].mxu0 %v310_v11 }
 0x213   :  { %2234 = vmatpush3.bf16.msra.mxu0 %v2654_v4  ;;  %1818 = vmatprep.mubr.msk.f32.mxu0 %vm2587_vm0, %v2588_v6  ;;  %v76_v13 = vadd.f32 %v75_v12, %v2760_v56 }
 0x214   :  { %2235 = vmatprep.subr.bf16.mxu0 %v2586_v3 }
 0x215   :  { %v80_v14 = vrot.slane %v76_v13, %v2763_v58 }
 0x217   :  { %2237 = vmatpush3.bf16.msra.mxu0 %v2662_v7 }
 0x218   :  { %2238 = vmatprep.subr.bf16.mxu0 %v2586_v3 }
 0x21b   :  { %2240 = vmatpush3.bf16.msra.mxu0 %v2672_v15 }
 0x21c   :  { %2241 = vmatprep.subr.bf16.mxu0 %v2586_v3 }
 0x21f   :  { %2243 = vmatpush3.bf16.msra.mxu0 %v2682_v22 }
 0x220   :  { %2244 = vmatprep.subr.bf16.mxu0 %v2586_v3 }
 0x223   :  { %2246 = vmatpush3.bf16.msra.mxu0 %v2690_v28 }
 0x224   :  { %2247 = vmatprep.subr.bf16.mxu0 %v2586_v3 }
 0x227   :  { %2249 = vmatpush3.bf16.msra.mxu0 %v2698_v34 }
 0x228   :  { %2250 = vmatprep.subr.bf16.mxu0 %v2586_v3 }
 0x22b   :  { %2252 = vmatpush3.bf16.msra.mxu0 %v2706_v38 }
 0x22c   :  { %2253 = vmatprep.subr.bf16.mxu0 %v2586_v3 }
 0x22f   :  { %2255 = vmatpush3.bf16.msra.mxu0 %v2712_v41 }
 0x230   :  { %2280 = vmatprep.subr.bf16.mxu0 %v2586_v3 }
 0x2e5   :  { %v395_v17 = vpop.f32.mrb[2].mxu0 }
 0x2e6   :  { %v396_v18 = vadd.f32 %v395_v17, %v80_v14  ;;  %v1750_v20 = vpop.f32.mrb[3].mxu0  ;;  %v1203_v17 = vld [vmem:[#allocation6] sm:$0xff] }
 0x2e7   :  { %v1205_v20 = vld [vmem:[#allocation6 + $0x10] sm:$0xff] }
 0x2e8   :  { %2483 = vtanh.f32 %v396_v18  ;;  %v1204_v18 = vld [vmem:[#allocation6 + $0x8] sm:$0xff] }
 0x2f2   :  { %v2484_v21 = vpop.eup %2483 }
 0x2f3   :  { %1784 = vmatmul.mubr.f32.vlgmr.msra.gmra.mrb[2].mxu1 %v2484_v21  ;;  %v2425_v21 = vpack.c.bf16 %v1204_v18, %v1203_v17 }
 0x2f4   :  { %2258 = vmatpush3.bf16.msra.mxu1 %v2674_v16  ;;  %1853 = vmatprep.mubr.msk.f32.mxu1 %vm2587_vm0, %v2588_v6 }
 0x2f5   :  { %2259 = vmatprep.subr.bf16.mxu1 %v2586_v3 }
 0x2f8   :  { %2261 = vmatpush3.bf16.msra.mxu1 %v2678_v19 }
 0x2f9   :  { %2262 = vmatprep.subr.bf16.mxu1 %v2586_v3 }
 0x2fc   :  { %2264 = vmatpush3.bf16.msra.mxu1 %v2686_v25 }
 0x2fd   :  { %2265 = vmatprep.subr.bf16.mxu1 %v2586_v3 }
 0x300   :  { %2267 = vmatpush3.bf16.msra.mxu1 %v2694_v31 }
 0x301   :  { %2268 = vmatprep.subr.bf16.mxu1 %v2586_v3 }
 0x304   :  { %2270 = vmatpush3.bf16.msra.mxu1 %v2702_v37 }
 0x305   :  { %2271 = vmatprep.subr.bf16.mxu1 %v2586_v3 }
 0x308   :  { %2273 = vmatpush3.bf16.msra.mxu1 %v2736_v44 }
 0x309   :  { %2274 = vmatprep.subr.bf16.mxu1 %v2586_v3 }
 0x30c   :  { %2276 = vmatpush3.bf16.msra.mxu1 %v2740_v47 }
 0x30d   :  { %2277 = vmatprep.subr.bf16.mxu1 %v2586_v3 }
 0x310   :  { %2279 = vmatpush3.bf16.msra.mxu1 %v2743_v50 }
 0x311   :  { %2304 = vmatprep.subr.bf16.mxu1 %v2586_v3 }
 0x3c6   :  { %v482_v23 = vpop.f32.mrb[2].mxu1 }
 0x3c7   :  { %v483_v26 = vadd.f32 %v2791_v0, %v482_v23  ;;  %v1785_v27 = vpop.f32.mrb[3].mxu1  ;;  %v1206_v23 = vld [vmem:[#allocation6 + $0x18] sm:$0xff] }
 0x3c8   :  { %v1208_v27 = vld [vmem:[#allocation6 + $0x28] sm:$0xff] }
 0x3c9   :  { %v487_v29 = vmul.f32 %v486_v24, %v483_v26  ;;  %v2428_v24 = vpack.c.bf16 %v1206_v23, %v1205_v20  ;;  %v1207_v26 = vld [vmem:[#allocation6 + $0x20] sm:$0xff] }
 0x3cb   :  { %v488_v30 = vadd.f32 %v487_v29, %v310_v11  ;;  %v2431_v29 = vpack.c.bf16 %v1208_v27, %v1207_v26  ;;  %v1376_v26 = vstv %s128_s17 }
 0x3cd   :  { %490 = vst [vmem:[#allocation9 + $0x10] sm:$0xff] %v488_v30  ;;  %1819 = vmatmul.mubr.f32.vlgmr.msra.gmra.mrb[4].mxu0 %v488_v30 }
 0x3ce   :  { %2282 = vmatpush3.bf16.msra.mxu0 %v2654_v4  ;;  %1888 = vmatprep.mubr.msk.f32.mxu0 %vm2587_vm0, %v2588_v6 }
 0x3cf   :  { %2283 = vmatprep.subr.bf16.mxu0 %v2586_v3 }
 0x3d2   :  { %2285 = vmatpush3.bf16.msra.mxu0 %v2662_v7 }
 0x3d3   :  { %2286 = vmatprep.subr.bf16.mxu0 %v2586_v3 }
 0x3d6   :  { %2288 = vmatpush3.bf16.msra.mxu0 %v2672_v15 }
 0x3d7   :  { %2289 = vmatprep.subr.bf16.mxu0 %v2586_v3 }
 0x3da   :  { %2291 = vmatpush3.bf16.msra.mxu0 %v2682_v22 }
 0x3db   :  { %2292 = vmatprep.subr.bf16.mxu0 %v2586_v3 }
 0x3de   :  { %2294 = vmatpush3.bf16.msra.mxu0 %v2690_v28 }
 0x3df   :  { %2295 = vmatprep.subr.bf16.mxu0 %v2586_v3 }
 0x3e2   :  { %2297 = vmatpush3.bf16.msra.mxu0 %v2698_v34 }
 0x3e3   :  { %2298 = vmatprep.subr.bf16.mxu0 %v2586_v3 }
 0x3e6   :  { %2300 = vmatpush3.bf16.msra.mxu0 %v2706_v38 }
 0x3e7   :  { %2301 = vmatprep.subr.bf16.mxu0 %v2586_v3 }
 0x3ea   :  { %2303 = vmatpush3.bf16.msra.mxu0 %v2712_v41 }
 0x3eb   :  { %2328 = vmatprep.subr.bf16.mxu0 %v2586_v3 }
 0x4a0   :  { %v573_v39 = vpop.f32.mrb[4].mxu0 }
 0x4a1   :  { %v574_v40 = vadd.f32 %v573_v39, %v88_v36  ;;  %v1820_v42 = vpop.f32.mrb[5].mxu0  ;;  %v1212_v36 = vld [vmem:[#allocation6 + $0x48] sm:$0xff] }
 0x4a2   :  { %v2437_v39 = vpack.c.bf16 %v1212_v36, %v1211_v35  ;;  %v1214_v42 = vld [vmem:[#allocation6 + $0x58] sm:$0xff] }
 0x4a3   :  { %2485 = vtanh.f32 %v574_v40  ;;  %v1213_v40 = vld [vmem:[#allocation6 + $0x50] sm:$0xff] }
 0x4ad   :  { %v2486_v43 = vpop.eup %2485 }
 0x4ae   :  { %1854 = vmatmul.mubr.f32.vlgmr.msra.gmra.mrb[4].mxu1 %v2486_v43  ;;  %v2440_v43 = vpack.c.bf16 %v1214_v42, %v1213_v40 }
 0x4af   :  { %2306 = vmatpush3.bf16.msra.mxu1 %v2674_v16  ;;  %1923 = vmatprep.mubr.msk.f32.mxu1 %vm2587_vm0, %v2588_v6 }
 0x4b0   :  { %2307 = vmatprep.subr.bf16.mxu1 %v2586_v3 }
 0x4b3   :  { %2309 = vmatpush3.bf16.msra.mxu1 %v2678_v19 }
 0x4b4   :  { %2310 = vmatprep.subr.bf16.mxu1 %v2586_v3 }
 0x4b7   :  { %2312 = vmatpush3.bf16.msra.mxu1 %v2686_v25 }
 0x4b8   :  { %2313 = vmatprep.subr.bf16.mxu1 %v2586_v3 }
 0x4bb   :  { %2315 = vmatpush3.bf16.msra.mxu1 %v2694_v31 }
 0x4bc   :  { %2316 = vmatprep.subr.bf16.mxu1 %v2586_v3 }
 0x4bf   :  { %2318 = vmatpush3.bf16.msra.mxu1 %v2702_v37 }
 0x4c0   :  { %2319 = vmatprep.subr.bf16.mxu1 %v2586_v3 }
 0x4c3   :  { %2321 = vmatpush3.bf16.msra.mxu1 %v2736_v44 }
 0x4c4   :  { %2322 = vmatprep.subr.bf16.mxu1 %v2586_v3 }
 0x4c7   :  { %2324 = vmatpush3.bf16.msra.mxu1 %v2740_v47 }
 0x4c8   :  { %2325 = vmatprep.subr.bf16.mxu1 %v2586_v3 }
 0x4cb   :  { %2327 = vmatpush3.bf16.msra.mxu1 %v2743_v50 }
 0x4cc   :  { %2352 = vmatprep.subr.bf16.mxu1 %v2586_v3 }
 0x581   :  { %v660_v45 = vpop.f32.mrb[4].mxu1 }
 0x582   :  { %v661_v48 = vadd.f32 %v2791_v0, %v660_v45  ;;  %v1855_v49 = vpop.f32.mrb[5].mxu1  ;;  %v106_v45 = vstv %s2968_s12 }
 0x584   :  { %v665_v51 = vmul.f32 %v664_v46, %v661_v48  ;;  %v107_v46 = vmul.f32 %v106_v45, %v2753_v52 }
 0x586   :  { %v666_v53 = vadd.f32 %v665_v51, %v488_v30  ;;  %v1209_v30 = vld [vmem:[#allocation6 + $0x30] sm:$0xff]  ;;  %v108_v48 = vadd.f32 %v107_v46, %v2760_v56 }
 0x587   :  { %v2434_v33 = vpack.c.bf16 %v1210_v32, %v1209_v30 }
 0x588   :  { %668 = vst [vmem:[#allocation9 + $0x18] sm:$0xff] %v666_v53  ;;  %1889 = vmatmul.mubr.f32.vlgmr.msra.gmra.mrb[6].mxu0 %v666_v53  ;;  %v112_v49 = vrot.slane %v108_v48, %v2763_v58 }
 0x589   :  { %2330 = vmatpush3.bf16.msra.mxu0 %v2654_v4  ;;  %1958 = vmatprep.mubr.msk.f32.mxu0 %vm2587_vm0, %v2588_v6 }
 0x58a   :  { %2331 = vmatprep.subr.bf16.mxu0 %v2586_v3 }
 0x58d   :  { %2333 = vmatpush3.bf16.msra.mxu0 %v2662_v7 }
 0x58e   :  { %2334 = vmatprep.subr.bf16.mxu0 %v2586_v3 }
 0x591   :  { %2336 = vmatpush3.bf16.msra.mxu0 %v2672_v15 }
 0x592   :  { %2337 = vmatprep.subr.bf16.mxu0 %v2586_v3 }
 0x595   :  { %2339 = vmatpush3.bf16.msra.mxu0 %v2682_v22 }
 0x596   :  { %2340 = vmatprep.subr.bf16.mxu0 %v2586_v3 }
 0x599   :  { %2342 = vmatpush3.bf16.msra.mxu0 %v2690_v28 }
 0x59a   :  { %2343 = vmatprep.subr.bf16.mxu0 %v2586_v3 }
 0x59d   :  { %2345 = vmatpush3.bf16.msra.mxu0 %v2698_v34 }
 0x59e   :  { %2346 = vmatprep.subr.bf16.mxu0 %v2586_v3 }
 0x5a1   :  { %2348 = vmatpush3.bf16.msra.mxu0 %v2706_v38 }
 0x5a2   :  { %2349 = vmatprep.subr.bf16.mxu0 %v2586_v3 }
 0x5a5   :  { %2351 = vmatpush3.bf16.msra.mxu0 %v2712_v41  ;;  %v842_v41 = vstv %s124_s11 }
 0x5a6   :  { %2376 = vmatprep.subr.bf16.mxu0 %v2586_v3 }
 0x65b   :  { %v751_v60 = vpop.f32.mrb[6].mxu0 }
 0x65c   :  { %v752_v61 = vadd.f32 %v751_v60, %v96_v59  ;;  %v1890_v62 = vpop.f32.mrb[7].mxu0  ;;  %v1291_v59 = vld [vmem:[#allocation7 + $0x8] sm:$0xff]  ;;  %v1292_v60 = vld [vmem:[#allocation7 + $0x10] sm:$0xff] }
 0x65d   :  { %v1293_v62 = vld [vmem:[#allocation7 + $0x18] sm:$0xff] }
 0x65e   :  { %2487 = vtanh.f32 %v752_v61  ;;  %v2449_v61 = vpack.c.bf16 %v1291_v59, %v1290_v57 }
 0x668   :  { %v2488_v63 = vpop.eup %2487 }
 0x669   :  { %1924 = vmatmul.mubr.f32.vlgmr.msra.gmra.mrb[6].mxu1 %v2488_v63  ;;  %v2452_v63 = vpack.c.bf16 %v1293_v62, %v1292_v60 }
 0x66a   :  { %2354 = vmatpush3.bf16.msra.mxu1 %v2674_v16  ;;  %1993 = vmatprep.mubr.msk.f32.mxu1 %vm2587_vm0, %v2588_v6 }
 0x66b   :  { %2355 = vmatprep.subr.bf16.mxu1 %v2586_v3 }
 0x66e   :  { %2357 = vmatpush3.bf16.msra.mxu1 %v2678_v19 }
 0x66f   :  { %2358 = vmatprep.subr.bf16.mxu1 %v2586_v3 }
 0x672   :  { %2360 = vmatpush3.bf16.msra.mxu1 %v2686_v25 }
 0x673   :  { %2361 = vmatprep.subr.bf16.mxu1 %v2586_v3 }
 0x676   :  { %2363 = vmatpush3.bf16.msra.mxu1 %v2694_v31 }
 0x677   :  { %2364 = vmatprep.subr.bf16.mxu1 %v2586_v3 }
 0x67a   :  { %2366 = vmatpush3.bf16.msra.mxu1 %v2702_v37 }
 0x67b   :  { %2367 = vmatprep.subr.bf16.mxu1 %v2586_v3 }
 0x67e   :  { %2369 = vmatpush3.bf16.msra.mxu1 %v2736_v44 }
 0x67f   :  { %2370 = vmatprep.subr.bf16.mxu1 %v2586_v3 }
 0x682   :  { %2372 = vmatpush3.bf16.msra.mxu1 %v2740_v47 }
 0x683   :  { %2373 = vmatprep.subr.bf16.mxu1 %v2586_v3 }
 0x686   :  { %2375 = vmatpush3.bf16.msra.mxu1 %v2743_v50 }
 0x687   :  { %2400 = vmatprep.subr.bf16.mxu1 %v2586_v3 }
 0x73c   :  { %v838_v38 = vpop.f32.mrb[6].mxu1 }
 0x73d   :  { %v839_v1 = vadd.f32 %v2791_v0, %v838_v38  ;;  %v1925_v2 = vpop.f32.mrb[7].mxu1  ;;  %v1294_v38 = vld [vmem:[#allocation7 + $0x20] sm:$0xff] }
 0x73e   :  { %v1296_v2 = vld [vmem:[#allocation7 + $0x30] sm:$0xff] }
 0x73f   :  { %v843_v5 = vmul.f32 %v842_v41, %v839_v1  ;;  %v1295_v41 = vld [vmem:[#allocation7 + $0x28] sm:$0xff] }
 0x740   :  { %v2455_v1 = vpack.c.bf16 %v1295_v41, %v1294_v38 }
 0x741   :  { %v844_v8 = vadd.f32 %v843_v5, %v666_v53  ;;  %v1297_v5 = vld [vmem:[#allocation7 + $0x38] sm:$0xff] }
 0x743   :  { %846 = vst [vmem:[#allocation9 + $0x20] sm:$0xff] %v844_v8  ;;  %1959 = vmatmul.mubr.f32.vlgmr.msra.gmra.mrb[8].mxu0 %v844_v8 }
 0x744   :  { %2378 = vmatpush3.bf16.msra.mxu0 %v2654_v4  ;;  %2028 = vmatprep.mubr.msk.f32.mxu0 %vm2587_vm0, %v2588_v6  ;;  %v98_v4 = vstv %s2925_s10 }
 0x745   :  { %2379 = vmatprep.subr.bf16.mxu0 %v2586_v3 }
 0x748   :  { %2381 = vmatpush3.bf16.msra.mxu0 %v2662_v7  ;;  %v99_v7 = vmul.f32 %v98_v4, %v2753_v52  ;;  %v1299_v4 = vld [vmem:[#allocation7 + $0x48] sm:$0xff] }
 0x749   :  { %2382 = vmatprep.subr.bf16.mxu0 %v2586_v3 }
 0x74a   :  { %v100_v9 = vadd.f32 %v99_v7, %v2760_v56 }
 0x74c   :  { %2384 = vmatpush3.bf16.msra.mxu0 %v2672_v15  ;;  %v104_v15 = vrot.slane %v100_v9, %v2763_v58 }
 0x74d   :  { %2385 = vmatprep.subr.bf16.mxu0 %v2586_v3 }
 0x750   :  { %2387 = vmatpush3.bf16.msra.mxu0 %v2682_v22 }
 0x751   :  { %2388 = vmatprep.subr.bf16.mxu0 %v2586_v3 }
 0x754   :  { %2390 = vmatpush3.bf16.msra.mxu0 %v2690_v28  ;;  %v1039_v28 = vld [vmem:[#allocation6 + $0x70] sm:$0xff] }
 0x755   :  { %2391 = vmatprep.subr.bf16.mxu0 %v2586_v3 }
 0x758   :  { %2393 = vmatpush3.bf16.msra.mxu0 %v2698_v34 }
 0x759   :  { %2394 = vmatprep.subr.bf16.mxu0 %v2586_v3 }
 0x816   :  { %v929_v11 = vpop.f32.mrb[8].mxu0 }
 0x817   :  { %v930_v10 = vadd.f32 %v929_v11, %v104_v15  ;;  %v1960_v22 = vpop.f32.mrb[9].mxu0  ;;  %v1198_v15 = vstv %s126_s15 }
 0x819   :  { %2489 = vtanh.f32 %v930_v10 }
 0x823   :  { %v2490_v12 = vpop.eup %2489 }
 0x824   :  { %1994 = vmatmul.mubr.f32.vlgmr.msra.gmra.mrb[8].mxu1 %v2490_v12 }
 0x825   :  { %2402 = vmatpush3.bf16.msra.mxu1 %v2674_v16  ;;  %2063 = vmatprep.mubr.msk.f32.mxu1 %vm2587_vm0, %v2588_v6  ;;  %v1037_v16 = vld [vmem:[#allocation6 + $0x60] sm:$0xff] }
 0x826   :  { %2403 = vmatprep.subr.bf16.mxu1 %v2586_v3 }
 0x829   :  { %2405 = vmatpush3.bf16.msra.mxu1 %v2678_v19  ;;  %v1038_v19 = vld [vmem:[#allocation6 + $0x68] sm:$0xff] }
 0x82a   :  { %2406 = vmatprep.subr.bf16.mxu1 %v2586_v3 }
 0x82d   :  { %2408 = vmatpush3.bf16.msra.mxu1 %v2686_v25  ;;  %v2395_v25 = vpack.c.bf16 %v1038_v19, %v1037_v16  ;;  %v1300_v16 = vld [vmem:[#allocation7 + $0x50] sm:$0xff]  ;;  %v1301_v19 = vld [vmem:[#allocation7 + $0x58] sm:$0xff] }
 0x82e   :  { %2409 = vmatprep.subr.bf16.mxu1 %v2586_v3 }
 0x82f   :  { %2396 = vmatpush3.bf16.msra.mxu0 %v2395_v25 }
 0x830   :  { %2397 = vmatprep.subr.bf16.mxu0 %v2586_v3 }
 0x831   :  { %2411 = vmatpush3.bf16.msra.mxu1 %v2694_v31  ;;  %v1040_v31 = vld [vmem:[#allocation6 + $0x78] sm:$0xff] }
 0x832   :  { %2412 = vmatprep.subr.bf16.mxu1 %v2586_v3  ;;  %v2398_v34 = vpack.c.bf16 %v1040_v31, %v1039_v28  ;;  %v1302_v28 = vld [vmem:[#allocation7 + $0x60] sm:$0xff]  ;;  %v1303_v31 = vld [vmem:[#allocation7 + $0x68] sm:$0xff] }
 0x834   :  { %2399 = vmatpush3.bf16.msra.mxu0 %v2398_v34 }
 0x835   :  { %2414 = vmatpush3.bf16.msra.mxu1 %v2702_v37  ;;  %2424 = vmatprep.subr.bf16.mxu0 %v2586_v3 }
 0x836   :  { %2415 = vmatprep.subr.bf16.mxu1 %v2586_v3 }
 0x839   :  { %2417 = vmatpush3.bf16.msra.mxu1 %v2736_v44  ;;  %v1020_v44 = vstv %s125_s13 }
 0x83a   :  { %2418 = vmatprep.subr.bf16.mxu1 %v2586_v3 }
 0x83d   :  { %2420 = vmatpush3.bf16.msra.mxu1 %v2740_v47 }
 0x83e   :  { %2421 = vmatprep.subr.bf16.mxu1 %v2586_v3 }
 0x841   :  { %2423 = vmatpush3.bf16.msra.mxu1 %v2743_v50 }
 0x842   :  { %2448 = vmatprep.subr.bf16.mxu1 %v2586_v3 }
 0x8f7   :  { %v1016_v37 = vpop.f32.mrb[8].mxu1 }
 0x8f8   :  { %v1017_v47 = vadd.f32 %v2791_v0, %v1016_v37  ;;  %v1995_v50 = vpop.f32.mrb[9].mxu1  ;;  %v1304_v37 = vld [vmem:[#allocation7 + $0x70] sm:$0xff] }
 0x8f9   :  { %v114_v50 = vstv %s2997_s14 }
 0x8fa   :  { %v1021_v13 = vmul.f32 %v1020_v44, %v1017_v47  ;;  %v1305_v44 = vld [vmem:[#allocation7 + $0x78] sm:$0xff] }
 0x8fb   :  { %v2470_v47 = vpack.c.bf16 %v1305_v44, %v1304_v37 }
 0x8fc   :  { %v2973_v14 = vadd.f32 %v1021_v13, %v844_v8  ;;  %v1298_v8 = vld [vmem:[#allocation7 + $0x40] sm:$0xff]  ;;  %v115_v13 = vmul.f32 %v114_v50, %v2753_v52 }
 0x8fd   :  { %v2461_v7 = vpack.c.bf16 %v1299_v4, %v1298_v8 }
 0x8fe   :  { %1024 = vst [vmem:[#allocation9 + $0x28] sm:$0xff] %v2973_v14  ;;  %2029 = vmatmul.mubr.f32.vlgmr.msra.gmra.mrb[10].mxu0 %v2973_v14 }
 0x8ff   :  { %2098 = vmatprep.mubr.msk.f32.mxu0 %vm2587_vm0, %v2588_v6  ;;  %2426 = vmatpush3.bf16.msra.mxu0 %v2425_v21 }
 0x900   :  { %2427 = vmatprep.subr.bf16.mxu0 %v2586_v3 }
 0x903   :  { %2429 = vmatpush3.bf16.msra.mxu0 %v2428_v24 }
 0x904   :  { %2430 = vmatprep.subr.bf16.mxu0 %v2586_v3 }
 0x907   :  { %2432 = vmatpush3.bf16.msra.mxu0 %v2431_v29 }
 0x908   :  { %2433 = vmatprep.subr.bf16.mxu0 %v2586_v3 }
 0x90b   :  { %2435 = vmatpush3.bf16.msra.mxu0 %v2434_v33 }
 0x90c   :  { %2436 = vmatprep.subr.bf16.mxu0 %v2586_v3 }
 0x90f   :  { %2438 = vmatpush3.bf16.msra.mxu0 %v2437_v39 }
 0x910   :  { %2439 = vmatprep.subr.bf16.mxu0 %v2586_v3 }
 0x913   :  { %2441 = vmatpush3.bf16.msra.mxu0 %v2440_v43 }
 0x914   :  { %2442 = vmatprep.subr.bf16.mxu0 %v2586_v3 }
 0x917   :  { %2444 = vmatpush3.bf16.msra.mxu0 %v2395_v25  ;;  %v2464_v25 = vpack.c.bf16 %v1301_v19, %v1300_v16 }
 0x918   :  { %2445 = vmatprep.subr.bf16.mxu0 %v2586_v3 }
 0x91b   :  { %2447 = vmatpush3.bf16.msra.mxu0 %v2398_v34  ;;  %v2467_v34 = vpack.c.bf16 %v1303_v31, %v1302_v28 }
 0x9d1   :  { %v1107_v51 = vpop.f32.mrb[10].mxu0 }
 0x9d2   :  { %v1108_v53 = vadd.f32 %v1107_v51, %v112_v49  ;;  %v2030_v54 = vpop.f32.mrb[11].mxu0 }
 0x9d4   :  { %2491 = vtanh.f32 %v1108_v53 }
 0x9de   :  { %v2492_v55 = vpop.eup %2491 }
 0x9df   :  { %2064 = vmatmul.mubr.f32.vlgmr.msra.gmra.mrb[10].mxu1 %v2492_v55 }
 0x9e0   :  { %2133 = vmatprep.mubr.msk.f32.mxu1 %vm2587_vm0, %v2588_v6  ;;  %2450 = vmatpush3.bf16.msra.mxu1 %v2449_v61  ;;  %v2458_v6 = vpack.c.bf16 %v1297_v5, %v1296_v2 }
 0x9e1   :  { %2451 = vmatprep.subr.bf16.mxu1 %v2586_v3 }
 0x9e4   :  { %2453 = vmatpush3.bf16.msra.mxu1 %v2452_v63 }
 0x9e5   :  { %2454 = vmatprep.subr.bf16.mxu1 %v2586_v3 }
 0x9e8   :  { %2456 = vmatpush3.bf16.msra.mxu1 %v2455_v1 }
 0x9e9   :  { %2457 = vmatprep.subr.bf16.mxu1 %v2586_v3 }
 0x9ec   :  { %2459 = vmatpush3.bf16.msra.mxu1 %v2458_v6 }
 0x9ed   :  { %2460 = vmatprep.subr.bf16.mxu1 %v2586_v3 }
 0x9f0   :  { %2462 = vmatpush3.bf16.msra.mxu1 %v2461_v7 }
 0x9f1   :  { %2463 = vmatprep.subr.bf16.mxu1 %v2586_v3 }
 0x9f4   :  { %2465 = vmatpush3.bf16.msra.mxu1 %v2464_v25 }
 0x9f5   :  { %2466 = vmatprep.subr.bf16.mxu1 %v2586_v3 }
 0x9f8   :  { %2468 = vmatpush3.bf16.msra.mxu1 %v2467_v34 }
 0x9f9   :  { %2469 = vmatprep.subr.bf16.mxu1 %v2586_v3 }
 0x9fc   :  { %2471 = vmatpush3.bf16.msra.mxu1 %v2470_v47 }
 0xab2   :  { %v1194_v9 = vpop.f32.mrb[10].mxu1 }
 0xab3   :  { %v1195_v11 = vadd.f32 %v2791_v0, %v1194_v9  ;;  %v2065_v10 = vpop.f32.mrb[11].mxu1 }
 0xab5   :  { %v1199_v22 = vmul.f32 %v1198_v15, %v1195_v11 }
 0xab7   :  { %v1200_v12 = vadd.f32 %v1199_v22, %v2973_v14  ;;  %v116_v14 = vadd.f32 %v115_v13, %v2760_v56 }
 0xab9   :  { %1202 = vst [vmem:[#allocation9 + $0x30] sm:$0xff] %v1200_v12  ;;  %2099 = vmatmul.mubr.f32.vlgmr.msra.gmra.mrb[12].mxu0 %v1200_v12  ;;  %v120_v17 = vrot.slane %v116_v14, %v2763_v58 }
 0xb8c   :  { %v1285_v18 = vpop.f32.mrb[12].mxu0 }
 0xb8d   :  { %v1286_v20 = vadd.f32 %v1285_v18, %v120_v17  ;;  %v2100_v21 = vpop.f32.mrb[13].mxu0 }
 0xb8f   :  { %2493 = vtanh.f32 %v1286_v20 }
 0xb99   :  { %v2494_v23 = vpop.eup %2493 }
 0xb9a   :  { %2134 = vmatmul.mubr.f32.vlgmr.msra.gmra.mrb[12].mxu1 %v2494_v23 }
 0xc6d   :  { %v1372_v24 = vpop.f32.mrb[12].mxu1 }
 0xc6e   :  { %v1373_v3 = vadd.f32 %v2791_v0, %v1372_v24  ;;  %v2135_v27 = vpop.f32.mrb[13].mxu1 }
 0xc70   :  { %v1377_v52 = vmul.f32 %v1376_v26, %v1373_v3 }
 0xc72   :  { %v1378_v29 = vadd.f32 %v1377_v52, %v1200_v12 }
 0xc74   :  { %1380 = vst [vmem:[#allocation9 + $0x38] sm:$0xff] %v1378_v29 }
 0xc75   :  { %2562 = shalt.err (!%p2559_p11)
}
 0xc76   :  { %s2563_s3 = scalar_lea.hbm %s3031_s5, 1024 }
 0xc77   :  { %p2564_p12 = scmp.ne.s32.totalorder %s3031_s5, %s2563_s3  ;;  %p2567_p13 = scmp.lt.u32.totalorder %s2563_s3, %s3031_s5 }
 0xc79   :  { %p2569_p0 = pnand %p2567_p13, %p2564_p12 }
 0xc7b   :  { %2572 = shalt.err (!%p2569_p0)
}
 0xc7c   :  { %1392 = dma.vmem_to_hbm [thread:$0]  %s1387_s19, 1024, %s3031_s5, [#allocation4], %s2583_s7, %s2583_s7, %s2584_s8  }
 0xc7d   :  { %2579 = dma.done.wait [#allocation4], 1024  }
 0xc7e   :  { %2580 = vsyncadd [#allocation4], 4294966272 }
 0xc7f   :  { %1396 = vsyncpa [#allocation3], 1 }
 0xc80   :  { %1397 = vsyncpa [#allocation8], 1 }
 0xc81   :  { %1398 = vsyncpa [#allocation4], 1 }
 0xc82   :  { %1399 = vsyncpa [#allocation5], 1 }

</bundles_post_ra>
